<compile_context>
chip_gen: v7x
topology: tpu7x:2x2x1
jax: 0.10.0
libtpu: 0.0.40
codegen_flags: <defaults>
</compile_context>

<pallas_src>
import functools

import jax
import jax.numpy as jnp
from jax.experimental import pallas as pl
from jax.experimental.pallas import tpu as pltpu

LANE = 128
SUBL = 8
BLOCK_ROWS = 4096          # 4096 x 128 f32 = 2 MiB input block per grid step
VMEM_LIMIT = 32 * 1024 * 1024


def _per_elem(x, target, gan_mode):
    """Elementwise loss term in f32 (shared by kernel and wrapper tail path)."""
    x = x.astype(jnp.float32)
    t = jnp.float32(target)
    if gan_mode == "lsgan":
        e = x - t
        return e * e
    # BCEWithLogitsLoss, numerically stable form:
    #   max(x, 0) - x*t + log1p(exp(-|x|))
    return jnp.maximum(x, 0.0) - x * t + jnp.log1p(jnp.exp(-jnp.abs(x)))


def _gan_loss_kernel(x_ref, acc_ref, *, gan_mode, target, rows_valid, blk_rows):
    j = pl.program_id(0)

    @pl.when(j == 0)
    def _():
        acc_ref[...] = jnp.zeros_like(acc_ref)

    per_elem = _per_elem(x_ref[...], target, gan_mode)

    base_row = j * blk_rows
    full_block = base_row + blk_rows <= rows_valid

    @pl.when(full_block)
    def _():
        # Fully valid block: pure elementwise VPU accumulate into (8,128).
        acc_ref[...] += per_elem.reshape(-1, SUBL, LANE).sum(axis=0)

    @pl.when(jnp.logical_not(full_block))
    def _():
        # Partial edge block: mask out-of-range rows (only the last block).
        rid = jax.lax.broadcasted_iota(jnp.int32, (blk_rows, 1), 0)
        valid = (base_row + rid) < rows_valid
        masked = jnp.where(valid, per_elem, 0.0)
        acc_ref[...] += masked.reshape(-1, SUBL, LANE).sum(axis=0)


@functools.partial(jax.jit, static_argnames=("real", "gan_mode", "block_rows"))
def gan_loss(pred, real, gan_mode="lsgan", block_rows=BLOCK_ROWS):
    """Equivalent of GANLoss(gan_mode)(pred, real) -> scalar mean loss.

    Note: `real` and `gan_mode` are compile-time (Python) arguments.
    """
    target = 1.0 if real else 0.0
    n = pred.size
    flat = pred.reshape(-1)

    itemsize = pred.dtype.itemsize
    # Align the kernel prefix to the dtype's native (sublane, lane) tile:
    # 8 rows for 4-byte, 16 for 2-byte, 32 for 1-byte dtypes.
    subl = max(SUBL, 32 // max(int(itemsize), 1))
    align = LANE * subl
    n_main = (n // align) * align

    total = jnp.float32(0.0)

    if n_main:
        rows = n_main // LANE                 # multiple of `subl`
        x2 = flat[:n_main].reshape(rows, LANE)  # copy-free when n == n_main

        tr = min(block_rows, rows)
        tr = max(subl, (tr // subl) * subl)   # keep tr a native-tile multiple
        nb = pl.cdiv(rows, tr)

        kernel = functools.partial(
            _gan_loss_kernel, gan_mode=gan_mode, target=target,
            rows_valid=rows, blk_rows=tr)

        flops = (3 if gan_mode == "lsgan" else 6) * n_main
        transc = 0 if gan_mode == "lsgan" else 2 * n_main

        acc = pl.pallas_call(
            kernel,
            out_shape=jax.ShapeDtypeStruct((SUBL, LANE), jnp.float32),
            grid_spec=pltpu.PrefetchScalarGridSpec(
                num_scalar_prefetch=0,
                grid=(nb,),
                in_specs=[pl.BlockSpec((tr, LANE), lambda j: (j, 0))],
                out_specs=pl.BlockSpec((SUBL, LANE), lambda j: (0, 0)),
            ),
            compiler_params=pltpu.CompilerParams(
                dimension_semantics=("arbitrary",),
                vmem_limit_bytes=VMEM_LIMIT),
            cost_estimate=pl.CostEstimate(
                flops=flops,
                transcendentals=transc,
                bytes_accessed=n_main * int(itemsize) + SUBL * LANE * 4),
        )(x2)
        total = total + jnp.sum(acc)

    if n_main < n:
        # Tiny ragged tail (< LANE*subl elements): handled in the wrapper so
        # the common aligned path stays copy-free (no full-array jnp.pad).
        tail = flat[n_main:]
        total = total + jnp.sum(_per_elem(tail, target, gan_mode))

    return total * jnp.float32(1.0 / n)


if __name__ == "__main__":
    key = jax.random.PRNGKey(0)
    k0, k1, k2 = jax.random.split(key, 3)

    def bce_ref(x, t):
        return jnp.mean(jnp.maximum(x, 0.0) - x * t
                        + jnp.log1p(jnp.exp(-jnp.abs(x))))

    # Discriminator-style prediction maps, NCHW.
    pred = jax.random.normal(k0, (2, 4, 16, 16), dtype=jnp.float32)      # aligned (2048)
    pred_odd = jax.random.normal(k1, (2, 1, 30, 30), dtype=jnp.float32)  # ragged (1800)
    pred_med = jax.random.normal(k2, (2, 4, 32, 32), dtype=jnp.float32)  # multi-block (8192)

    loss_lsgan_real = gan_loss(pred, real=True, gan_mode="lsgan")
    loss_lsgan_fake = gan_loss(pred, real=False, gan_mode="lsgan")
    loss_vanilla = gan_loss(pred, real=True, gan_mode="vanilla")
    loss_odd = gan_loss(pred_odd, real=True, gan_mode="lsgan")
    loss_odd_v = gan_loss(pred_odd, real=False, gan_mode="vanilla")
    loss_med = gan_loss(pred_med, real=True, gan_mode="lsgan", block_rows=16)

    jax.block_until_ready((loss_lsgan_real, loss_lsgan_fake, loss_vanilla,
                           loss_odd, loss_odd_v, loss_med))

    # Correctness checks against plain-JAX references.
    assert jnp.allclose(loss_lsgan_real, jnp.mean((pred - 1.0) ** 2), atol=1e-5)
    assert jnp.allclose(loss_lsgan_fake, jnp.mean(pred ** 2), atol=1e-5)
    assert jnp.allclose(loss_vanilla, bce_ref(pred, 1.0), atol=1e-5)
    assert jnp.allclose(loss_odd, jnp.mean((pred_odd - 1.0) ** 2), atol=1e-5)
    assert jnp.allclose(loss_odd_v, bce_ref(pred_odd, 0.0), atol=1e-5)
    assert jnp.allclose(loss_med, jnp.mean((pred_med - 1.0) ** 2), atol=1e-5)

    print("KERNEL_OK")
</pallas_src>

<mosaic_0001>
module attributes {stable_mosaic.version = 11 : i64} {
  func.func @_gan_loss_kernel(%arg0: i32, %arg1: memref<16x128xf32, #tpu.memory_space<vmem>>, %arg2: memref<8x128xf32, #tpu.memory_space<vmem>>) attributes {dimension_semantics = [#tpu.dimension_semantics<arbitrary>], iteration_bounds = array<i64: 1>, scalar_prefetch = 0 : i64, scratch_operands = 0 : i64, tpu.core_type = #tpu.core_type<tc>, window_params = [{transform_indices = @transform_0, window_bounds = array<i64: 16, 128>}, {pipeline_mode = #tpu.pipeline_mode<synchronous>, transform_indices = @transform_1, window_bounds = array<i64: 8, 128>}]} {
    %c0_i32 = arith.constant 0 : i32
    %0 = arith.cmpi eq, %arg0, %c0_i32 : i32
    %1 = arith.extui %0 : i1 to i32
    %c0_i32_0 = arith.constant 0 : i32
    %2 = arith.cmpi ne, %1, %c0_i32_0 : i32
    scf.if %2 {
      %cst_6 = arith.constant 0.000000e+00 : f32
      %15 = vector.broadcast %cst_6 : f32 to vector<8x128xf32>
      %c0_7 = arith.constant 0 : index
      %c0_8 = arith.constant 0 : index
      %16 = vector.load %arg2[%c0_7, %c0_8] : memref<8x128xf32, #tpu.memory_space<vmem>>, vector<8x128xf32>
      tpu.vector_store %arg2[%c0_7, %c0_8], %15 {strides = array<i32>} : memref<8x128xf32, #tpu.memory_space<vmem>>, vector<8x128xf32>,
    } else {
    }
    %c0 = arith.constant 0 : index
    %c0_1 = arith.constant 0 : index
    %3 = vector.load %arg1[%c0, %c0_1] : memref<16x128xf32, #tpu.memory_space<vmem>>, vector<16x128xf32>
    %cst = arith.constant 1.000000e+00 : f32
    %4 = vector.broadcast %cst : f32 to vector<16x128xf32>
    %5 = arith.subf %3, %4 : vector<16x128xf32>
    %6 = arith.mulf %5, %5 : vector<16x128xf32>
    %c16_i32 = arith.constant 16 : i32
    %7 = arith.muli %arg0, %c16_i32 : i32
    %c16_i32_2 = arith.constant 16 : i32
    %8 = arith.addi %7, %c16_i32_2 : i32
    %c16_i32_3 = arith.constant 16 : i32
    %9 = arith.cmpi sle, %8, %c16_i32_3 : i32
    %10 = arith.extui %9 : i1 to i32
    %c0_i32_4 = arith.constant 0 : i32
    %11 = arith.cmpi ne, %10, %c0_i32_4 : i32
    scf.if %11 {
      %c0_6 = arith.constant 0 : index
      %c0_7 = arith.constant 0 : index
      %15 = vector.load %arg2[%c0_6, %c0_7] : memref<8x128xf32, #tpu.memory_space<vmem>>, vector<8x128xf32>
      %16 = vector.shape_cast %6 : vector<16x128xf32> to vector<2x8x128xf32>
      %cst_8 = arith.constant dense<0.000000e+00> : vector<8x128xf32>
      %17 = vector.multi_reduction <add>, %16, %cst_8 [0] : vector<2x8x128xf32> to vector<8x128xf32>
      %18 = arith.addf %15, %17 : vector<8x128xf32>
      %c0_9 = arith.constant 0 : index
      %c0_10 = arith.constant 0 : index
      %19 = vector.load %arg2[%c0_9, %c0_10] : memref<8x128xf32, #tpu.memory_space<vmem>>, vector<8x128xf32>
      tpu.vector_store %arg2[%c0_9, %c0_10], %18 {strides = array<i32>} : memref<8x128xf32, #tpu.memory_space<vmem>>, vector<8x128xf32>,
    } else {
    }
    %true = arith.constant true
    %12 = arith.xori %9, %true : i1
    %13 = arith.extui %12 : i1 to i32
    %c0_i32_5 = arith.constant 0 : i32
    %14 = arith.cmpi ne, %13, %c0_i32_5 : i32
    scf.if %14 {
      %15 = tpu.iota {dimensions = array<i32: 0>} : vector<16x1xi32>
      %16 = vector.broadcast %7 : i32 to vector<16x1xi32>
      %17 = arith.addi %16, %15 : vector<16x1xi32>
      %c16_i32_6 = arith.constant 16 : i32
      %18 = vector.broadcast %c16_i32_6 : i32 to vector<16x1xi32>
      %19 = arith.cmpi slt, %17, %18 : vector<16x1xi32>
      %cst_7 = arith.constant 0.000000e+00 : f32
      %20 = vector.shape_cast %19 : vector<16x1xi1> to vector<16x1xi1>
      %21 = vector.broadcast %20 : vector<16x1xi1> to vector<16x128xi1>
      %22 = vector.broadcast %cst_7 : f32 to vector<16x128xf32>
      %23 = arith.select %21, %6, %22 : vector<16x128xi1>, vector<16x128xf32>
      %c0_8 = arith.constant 0 : index
      %c0_9 = arith.constant 0 : index
      %24 = vector.load %arg2[%c0_8, %c0_9] : memref<8x128xf32, #tpu.memory_space<vmem>>, vector<8x128xf32>
      %25 = vector.shape_cast %23 : vector<16x128xf32> to vector<2x8x128xf32>
      %cst_10 = arith.constant dense<0.000000e+00> : vector<8x128xf32>
      %26 = vector.multi_reduction <add>, %25, %cst_10 [0] : vector<2x8x128xf32> to vector<8x128xf32>
      %27 = arith.addf %24, %26 : vector<8x128xf32>
      %c0_11 = arith.constant 0 : index
      %c0_12 = arith.constant 0 : index
      %28 = vector.load %arg2[%c0_11, %c0_12] : memref<8x128xf32, #tpu.memory_space<vmem>>, vector<8x128xf32>
      tpu.vector_store %arg2[%c0_11, %c0_12], %27 {strides = array<i32>} : memref<8x128xf32, #tpu.memory_space<vmem>>, vector<8x128xf32>,
    } else {
    }
    return
  }
  func.func @transform_0(%arg0: i32) -> (i32, i32) {
    %c0_i32 = arith.constant 0 : i32
    %c0_i32_0 = arith.constant 0 : i32
    return %arg0, %c0_i32 : i32, i32
  }
  func.func @transform_1(%arg0: i32) -> (i32, i32) {
    %c0_i32 = arith.constant 0 : i32
    %c0_i32_0 = arith.constant 0 : i32
    %c0_i32_1 = arith.constant 0 : i32
    return %c0_i32, %c0_i32_0 : i32, i32
  }
}

</mosaic_0001>

<bundles_post_ra>
// kernel: gan_loss.1
= control target key start
LH: loop header
LB: loop body
LE: loop exit
PB: predicated region body
PF: predicated region fallthrough
CT: control target
= control target key end

     0   :  { %s77_s0 = inlined_call_operand.vmem [shape: f32[16,128], index: 0, kind: input, shape index: {}]   ;;  %s78_s1 = inlined_call_operand.vmem [shape: f32[8,128], index: 1, kind: output, shape index: {}]  }
   0x1   :  { %v13_v0 = vld [vmem:[%s77_s0] sm:$0xff]  ;;  %v14_v1 = vld [vmem:[%s77_s0 + $0x8] sm:$0xff] }
   0x2   :  { %v55_v2 = vadd.f32 -1.0, %v13_v0  ;;  %v56_v3 = vadd.f32 -1.0, %v14_v1 }
   0x4   :  { %v17_v4 = vmul.f32 %v55_v2, %v55_v2  ;;  %v18_v5 = vmul.f32 %v56_v3, %v56_v3 }
   0x6   :  { %v26_v6 = vadd.f32 %v18_v5, %v17_v4 }
   0x8   :  { %28 = vst [vmem:[%s78_s1] sm:$0xff] %v26_v6 }

</bundles_post_ra>
